<compile_context>
chip_gen: v7x
topology: tpu7x:2x2x1
jax: 0.10.0
libtpu: 0.0.40
codegen_flags: <defaults>
</compile_context>

<pallas_src>
import math
import functools

import jax
import jax.numpy as jnp
import numpy as np
from jax.experimental import pallas as pl
from jax.experimental.pallas import tpu as pltpu

EPS = 1e-5                      # F.layer_norm eps in the PyTorch module
MM_DTYPE = jnp.bfloat16         # MXU input dtype (accumulation stays f32)
NEG_INF = -1e30                 # finite mask value (avoids inf-inf NaNs)


# ----------------------------- kernel helpers ------------------------------

def _ln(v, g, b):
    mu = jnp.mean(v, axis=-1, keepdims=True)
    var = jnp.mean((v - mu) ** 2, axis=-1, keepdims=True)
    return (v - mu) * jax.lax.rsqrt(var + EPS) * g + b


def _gelu_tanh(x):
    # tanh-approx GELU: transcendental lands on the EUP slot instead of the VALU.
    # TODO(synk): nn.GELU() default is exact erf; tanh approx is a tiny
    # model-fidelity deviation (covered by the 2e-2 tolerance below).
    c = 0.7978845608028654  # sqrt(2/pi)
    return 0.5 * x * (1.0 + jnp.tanh(c * (x + 0.044715 * (x * x * x))))


def _physical_vmem_bytes():
    try:
        info = pltpu.get_tpu_info()
        cap = getattr(info, "vmem_capacity_bytes", None)
        if cap:
            return int(cap)
    except Exception:
        pass
    return 64 * 2 ** 20          # conservative: v7x per-TensorCore VMEM


def _vmem_limit(resident_bytes):
    # ~25% headroom under physical VMEM for compiler scratch / spills:
    # -> ~48 MiB on v7x (64 MiB), ~96 MiB on v5e/v6e (128 MiB).
    ceiling = _physical_vmem_bytes() * 3 // 4
    return int(min(max(4 * resident_bytes, 32 * 2 ** 20), ceiling))


# ----------------------------- Pallas kernels ------------------------------

def block_kernel(x_ref, ln1g, ln1b, w_qkv, b_qkv, w_pr, b_pr,
                 ln2g, ln2b, w_fc, b_fc, w_mp, b_mp, out_ref,
                 attn_acc, *, n_head):
    x = x_ref[0].astype(jnp.float32)                      # (T, C) residual, f32
    T, C = x.shape
    D = C // n_head

    # ---- causal self attention ----
    h = _ln(x, ln1g[...], ln1b[...]).astype(MM_DTYPE)     # (T, C) bf16

    # Fused QKV projection: one (T,C)@(C,3C) MXU pass.
    # 1/sqrt(D) is pre-folded into the q columns of w_qkv / b_qkv.
    qkv = jnp.dot(h, w_qkv[...], preferred_element_type=jnp.float32) + b_qkv[...]

    row = jax.lax.broadcasted_iota(jnp.int32, (T, T), 0)
    col = jax.lax.broadcasted_iota(jnp.int32, (T, T), 1)
    causal = row >= col

    dn_tt = (((1,), (1,)), ((), ()))   # (T,D)x(T,D) -> (T,T), contract last dims

    # Per-head score / PV matmuls (inherently D-wide); projections stay fused.
    for hh in range(n_head):
        q_h = qkv[:, hh * D:(hh + 1) * D].astype(MM_DTYPE)            # scale folded
        k_h = qkv[:, C + hh * D:C + (hh + 1) * D].astype(MM_DTYPE)
        v_h = qkv[:, 2 * C + hh * D:2 * C + (hh + 1) * D].astype(MM_DTYPE)

        s = jax.lax.dot_general(q_h, k_h, dn_tt,
                                preferred_element_type=jnp.float32)   # (T, T)
        s = jnp.where(causal, s, NEG_INF)
        s = s - jnp.max(s, axis=-1, keepdims=True)
        p = jnp.exp(s)
        p = p * pl.reciprocal(jnp.sum(p, axis=-1, keepdims=True), approx=True)

        a_h = jnp.dot(p.astype(MM_DTYPE), v_h,
                      preferred_element_type=jnp.float32)             # (T, D)
        attn_acc[:, hh * D:(hh + 1) * D] = a_h.astype(attn_acc.dtype)

    # Fused output projection: one (T,C)@(C,C) MXU pass.
    y = jnp.dot(attn_acc[...], w_pr[...],
                preferred_element_type=jnp.float32) + b_pr[...]
    x = x + y                                             # residual (f32)

    # ---- MLP ----
    h2 = _ln(x, ln2g[...], ln2b[...]).astype(MM_DTYPE)
    f = jnp.dot(h2, w_fc[...], preferred_element_type=jnp.float32) + b_fc[...]
    f = _gelu_tanh(f)
    f = jnp.dot(f.astype(MM_DTYPE), w_mp[...],
                preferred_element_type=jnp.float32) + b_mp[...]
    out_ref[0] = (x + f).astype(out_ref.dtype)


def head_kernel(x_ref, lnfg, lnfb, wlm_ref, out_ref, h_scratch):
    # ln_f(x_last) is computed once (first vocab tile) and reused for all tiles.
    @pl.when(pl.program_id(0) == 0)
    def _():
        x = x_ref[...].astype(jnp.float32)                # (B, C)
        h_scratch[...] = _ln(x, lnfg[...], lnfb[...]).astype(h_scratch.dtype)

    out_ref[...] = jnp.dot(h_scratch[...], wlm_ref[...],
                           preferred_element_type=jnp.float32).astype(out_ref.dtype)


# ------------------------------- wrappers ----------------------------------

def run_block(x, lp, n_head):
    B, T, C = x.shape
    weights = [lp['ln1_g'], lp['ln1_b'],
               lp['w_qkv'], lp['b_qkv'], lp['w_pr'], lp['b_pr'],
               lp['ln2_g'], lp['ln2_b'],
               lp['w_fc'], lp['b_fc'], lp['w_mp'], lp['b_mp']]

    in_specs = [pl.BlockSpec((1, T, C), lambda b: (b, 0, 0))]
    in_specs += [pl.BlockSpec(w.shape, lambda b, _n=w.ndim: (0,) * _n)
                 for w in weights]

    w_bytes = sum(int(w.size) * w.dtype.itemsize for w in weights)
    x_blk = T * C * x.dtype.itemsize
    # double-buffered weights + x in/out + qkv/MLP intermediates
    resident = 2 * w_bytes + 2 * x_blk + T * (4 * C + 3 * C) * 4

    return pl.pallas_call(
        functools.partial(block_kernel, n_head=n_head),
        out_shape=jax.ShapeDtypeStruct((B, T, C), x.dtype),
        grid=(B,),
        in_specs=in_specs,
        out_specs=pl.BlockSpec((1, T, C), lambda b: (b, 0, 0)),
        scratch_shapes=[pltpu.VMEM((T, C), MM_DTYPE)],     # attention output assembly
        compiler_params=pltpu.CompilerParams(
            dimension_semantics=("parallel",),
            vmem_limit_bytes=_vmem_limit(resident)),
    )(x, *weights)


def run_head(x_last, lnfg, lnfb, wlm_padded, vocab):
    B, C = x_last.shape
    Vp = wlm_padded.shape[1]                              # already multiple of 128
    tv = next(c for c in (4096, 2048, 1024, 512, 256, 128) if Vp % c == 0)

    resident = (B * C * 4 + 2 * C * tv * wlm_padded.dtype.itemsize
                + 2 * B * tv * 4 + 2 * int(lnfg.size) * 4 + B * C * 2)

    logits = pl.pallas_call(
        head_kernel,
        out_shape=jax.ShapeDtypeStruct((B, Vp), jnp.float32),
        grid=(Vp // tv,),
        in_specs=[pl.BlockSpec((B, C), lambda j: (0, 0)),
                  pl.BlockSpec(lnfg.shape, lambda j: (0, 0)),
                  pl.BlockSpec(lnfb.shape, lambda j: (0, 0)),
                  pl.BlockSpec((C, tv), lambda j: (0, j))],
        out_specs=pl.BlockSpec((B, tv), lambda j: (0, j)),
        scratch_shapes=[pltpu.VMEM((B, C), MM_DTYPE)],     # ln_f(x_last), computed once
        compiler_params=pltpu.CompilerParams(
            # "arbitrary": the ln_f scratch written at j==0 must be visible to
            # every later vocab tile (don't shard this axis across cores).
            dimension_semantics=("arbitrary",),
            vmem_limit_bytes=_vmem_limit(resident)),
    )(x_last, lnfg, lnfb, wlm_padded)
    return logits[:, :vocab]


def gpt_forward(idx, params, n_head):
    B, T = idx.shape
    tok = params['wte'][idx]                 # (B, T, C) token-embedding gather (glue)
    pos = params['wpe'][:T][None]            # (1, T, C) position embedding
    x = tok + pos                            # dropout(p) -> identity (eval mode)
    for lp in params['layers']:
        x = run_block(x, lp, n_head)
    x_last = x[:, -1, :]                     # only the last token feeds ln_f/lm_head
    logits = run_head(x_last, params['lnf_g'], params['lnf_b'],
                      params['wlm'], params['vocab'])
    return logits[:, None, :]                # (B, 1, V)


# --------------------------- params / reference ----------------------------

def init_params(key, vocab, n_layer, n_head, n_embd, block_size):
    """Canonical float32 params, PyTorch-equivalent layout."""
    keys = jax.random.split(key, 3 + n_layer)
    proj_std = 0.02 / math.sqrt(2 * n_layer)   # GPT c_proj re-init
    params = dict(
        wte=0.02 * jax.random.normal(keys[0], (vocab, n_embd), jnp.float32),
        wpe=0.02 * jax.random.normal(keys[1], (block_size, n_embd), jnp.float32),
        lnf_g=jnp.ones((n_embd,), jnp.float32),
        lnf_b=jnp.zeros((n_embd,), jnp.float32),
        wlm=0.02 * jax.random.normal(keys[2], (n_embd, vocab), jnp.float32),
        layers=[],
    )
    for l in range(n_layer):
        k = jax.random.split(keys[3 + l], 4)
        params['layers'].append(dict(
            ln1_g=jnp.ones((n_embd,), jnp.float32),
            ln1_b=jnp.zeros((n_embd,), jnp.float32),
            w_qkv=0.02 * jax.random.normal(k[0], (n_embd, 3 * n_embd), jnp.float32),
            b_qkv=jnp.zeros((3 * n_embd,), jnp.float32),
            w_pr=proj_std * jax.random.normal(k[1], (n_embd, n_embd), jnp.float32),
            b_pr=jnp.zeros((n_embd,), jnp.float32),
            ln2_g=jnp.ones((n_embd,), jnp.float32),
            ln2_b=jnp.zeros((n_embd,), jnp.float32),
            w_fc=0.02 * jax.random.normal(k[2], (n_embd, 4 * n_embd), jnp.float32),
            b_fc=jnp.zeros((4 * n_embd,), jnp.float32),
            w_mp=proj_std * jax.random.normal(k[3], (4 * n_embd, n_embd), jnp.float32),
            b_mp=jnp.zeros((n_embd,), jnp.float32),
        ))
    return params


def prepare_params(raw, n_head):
    """Canonical f32 params -> kernel-ready params: bf16 matmul weights,
    1/sqrt(D) folded into the q slice of the fused QKV weight/bias,
    row-vector biases, lm_head weight padded to a multiple of 128 lanes."""
    C = raw['wte'].shape[1]
    D = C // n_head
    scale = 1.0 / math.sqrt(D)
    V = raw['wlm'].shape[1]
    Vp = ((V + 127) // 128) * 128
    wlm = raw['wlm'] if Vp == V else jnp.pad(raw['wlm'], ((0, 0), (0, Vp - V)))

    def row(v):
        return v.reshape(1, -1)

    q_scale = jnp.concatenate([jnp.full((C,), scale, jnp.float32),
                               jnp.ones((2 * C,), jnp.float32)])

    prepared = dict(
        wte=raw['wte'], wpe=raw['wpe'],
        lnf_g=row(raw['lnf_g']), lnf_b=row(raw['lnf_b']),
        wlm=wlm.astype(MM_DTYPE), vocab=V, layers=[],
    )
    for lp in raw['layers']:
        prepared['layers'].append(dict(
            ln1_g=row(lp['ln1_g']), ln1_b=row(lp['ln1_b']),
            w_qkv=(lp['w_qkv'] * q_scale[None, :]).astype(MM_DTYPE),
            b_qkv=row(lp['b_qkv'] * q_scale),
            w_pr=lp['w_pr'].astype(MM_DTYPE), b_pr=row(lp['b_pr']),
            ln2_g=row(lp['ln2_g']), ln2_b=row(lp['ln2_b']),
            w_fc=lp['w_fc'].astype(MM_DTYPE), b_fc=row(lp['b_fc']),
            w_mp=lp['w_mp'].astype(MM_DTYPE), b_mp=row(lp['b_mp']),
        ))
    return prepared


def ref_forward(idx, raw, n_head):
    """Pure-JAX f32 reference replicating the PyTorch forward (eval mode)."""
    B, T = idx.shape
    C = raw['wte'].shape[1]
    D = C // n_head
    x = raw['wte'][idx] + raw['wpe'][:T][None]

    def ln(v, g, b):
        mu = v.mean(-1, keepdims=True)
        var = ((v - mu) ** 2).mean(-1, keepdims=True)
        return (v - mu) * jax.lax.rsqrt(var + EPS) * g + b

    mask = jnp.tril(jnp.ones((T, T), bool))
    for lp in raw['layers']:
        h = ln(x, lp['ln1_g'], lp['ln1_b'])
        qkv = h @ lp['w_qkv'] + lp['b_qkv']
        q, k, v = jnp.split(qkv, 3, axis=-1)
        q = q.reshape(B, T, n_head, D).transpose(0, 2, 1, 3)
        k = k.reshape(B, T, n_head, D).transpose(0, 2, 1, 3)
        v = v.reshape(B, T, n_head, D).transpose(0, 2, 1, 3)
        att = jnp.einsum('bhtd,bhsd->bhts', q, k) / math.sqrt(D)
        att = jnp.where(mask, att, -jnp.inf)
        att = jax.nn.softmax(att, axis=-1)
        y = jnp.einsum('bhts,bhsd->bhtd', att, v)
        y = y.transpose(0, 2, 1, 3).reshape(B, T, C)
        y = y @ lp['w_pr'] + lp['b_pr']
        x = x + y
        h2 = ln(x, lp['ln2_g'], lp['ln2_b'])
        f = h2 @ lp['w_fc'] + lp['b_fc']
        f = 0.5 * f * (1.0 + jax.lax.erf(f / math.sqrt(2.0)))   # exact GELU
        x = x + f @ lp['w_mp'] + lp['b_mp']
    x_last = ln(x[:, -1:, :], raw['lnf_g'], raw['lnf_b'])
    return x_last @ raw['wlm']


# --------------------------------- main -------------------------------------

if __name__ == "__main__":
    # Small GPT config: vocab=256, n_layer=2, n_head=4, n_embd=64, block_size=16
    vocab, n_layer, n_head, n_embd, block_size = 256, 2, 4, 64, 16
    B, T = 2, 8

    key = jax.random.PRNGKey(0)
    pkey, ikey = jax.random.split(key)
    raw_params = init_params(pkey, vocab, n_layer, n_head, n_embd, block_size)
    params = prepare_params(raw_params, n_head)
    idx = jax.random.randint(ikey, (B, T), 0, vocab, jnp.int32)

    logits = gpt_forward(idx, params, n_head)     # (B, 1, vocab) — loss=None path
    jax.block_until_ready(logits)

    ref = ref_forward(idx, raw_params, n_head)
    np.testing.assert_allclose(np.asarray(logits), np.asarray(ref),
                               rtol=2e-2, atol=2e-2)

    print("KERNEL_OK")
</pallas_src>

<mosaic_0001>
module attributes {stable_mosaic.version = 11 : i64} {
  func.func @block_kernel(%arg0: i32, %arg1: memref<1x8x64xf32, #tpu.memory_space<vmem>>, %arg2: memref<1x64xf32, #tpu.memory_space<vmem>>, %arg3: memref<1x64xf32, #tpu.memory_space<vmem>>, %arg4: memref<64x192xbf16, #tpu.memory_space<vmem>>, %arg5: memref<1x192xf32, #tpu.memory_space<vmem>>, %arg6: memref<64x64xbf16, #tpu.memory_space<vmem>>, %arg7: memref<1x64xf32, #tpu.memory_space<vmem>>, %arg8: memref<1x64xf32, #tpu.memory_space<vmem>>, %arg9: memref<1x64xf32, #tpu.memory_space<vmem>>, %arg10: memref<64x256xbf16, #tpu.memory_space<vmem>>, %arg11: memref<1x256xf32, #tpu.memory_space<vmem>>, %arg12: memref<256x64xbf16, #tpu.memory_space<vmem>>, %arg13: memref<1x64xf32, #tpu.memory_space<vmem>>, %arg14: memref<1x8x64xf32, #tpu.memory_space<vmem>>, %arg15: memref<8x64xbf16, #tpu.memory_space<vmem>>) attributes {dimension_semantics = [#tpu.dimension_semantics<parallel>], iteration_bounds = array<i64: 2>, scalar_prefetch = 0 : i64, scratch_operands = 1 : i64, tpu.core_type = #tpu.core_type<tc>, window_params = [{transform_indices = @transform_0, window_bounds = array<i64: 1, 8, 64>}, {pipeline_mode = #tpu.pipeline_mode<synchronous>, transform_indices = @transform_1, window_bounds = array<i64: 1, 64>}, {pipeline_mode = #tpu.pipeline_mode<synchronous>, transform_indices = @transform_2, window_bounds = array<i64: 1, 64>}, {pipeline_mode = #tpu.pipeline_mode<synchronous>, transform_indices = @transform_3, window_bounds = array<i64: 64, 192>}, {pipeline_mode = #tpu.pipeline_mode<synchronous>, transform_indices = @transform_4, window_bounds = array<i64: 1, 192>}, {pipeline_mode = #tpu.pipeline_mode<synchronous>, transform_indices = @transform_5, window_bounds = array<i64: 64, 64>}, {pipeline_mode = #tpu.pipeline_mode<synchronous>, transform_indices = @transform_6, window_bounds = array<i64: 1, 64>}, {pipeline_mode = #tpu.pipeline_mode<synchronous>, transform_indices = @transform_7, window_bounds = array<i64: 1, 64>}, {pipeline_mode = #tpu.pipeline_mode<synchronous>, transform_indices = @transform_8, window_bounds = array<i64: 1, 64>}, {pipeline_mode = #tpu.pipeline_mode<synchronous>, transform_indices = @transform_9, window_bounds = array<i64: 64, 256>}, {pipeline_mode = #tpu.pipeline_mode<synchronous>, transform_indices = @transform_10, window_bounds = array<i64: 1, 256>}, {pipeline_mode = #tpu.pipeline_mode<synchronous>, transform_indices = @transform_11, window_bounds = array<i64: 256, 64>}, {pipeline_mode = #tpu.pipeline_mode<synchronous>, transform_indices = @transform_12, window_bounds = array<i64: 1, 64>}, {transform_indices = @transform_13, window_bounds = array<i64: 1, 8, 64>}]} {
    %c0 = arith.constant 0 : index
    %c0_0 = arith.constant 0 : index
    %c0_1 = arith.constant 0 : index
    %0 = vector.load %arg1[%c0, %c0_0, %c0_1] : memref<1x8x64xf32, #tpu.memory_space<vmem>>, vector<1x8x64xf32>
    %1 = vector.shape_cast %0 : vector<1x8x64xf32> to vector<8x64xf32>
    %c0_2 = arith.constant 0 : index
    %c0_3 = arith.constant 0 : index
    %2 = vector.load %arg2[%c0_2, %c0_3] : memref<1x64xf32, #tpu.memory_space<vmem>>, vector<1x64xf32>
    %c0_4 = arith.constant 0 : index
    %c0_5 = arith.constant 0 : index
    %3 = vector.load %arg3[%c0_4, %c0_5] : memref<1x64xf32, #tpu.memory_space<vmem>>, vector<1x64xf32>
    %cst = arith.constant dense<0.000000e+00> : vector<8xf32>
    %4 = vector.multi_reduction <add>, %1, %cst [1] : vector<8x64xf32> to vector<8xf32>
    %5 = vector.shape_cast %4 : vector<8xf32> to vector<8x1xf32>
    %cst_6 = arith.constant 6.400000e+01 : f32
    %6 = vector.broadcast %cst_6 : f32 to vector<8x1xf32>
    %7 = arith.divf %5, %6 : vector<8x1xf32>
    %8 = vector.broadcast %7 : vector<8x1xf32> to vector<8x64xf32>
    %9 = arith.subf %1, %8 : vector<8x64xf32>
    %10 = arith.mulf %9, %9 : vector<8x64xf32>
    %cst_7 = arith.constant dense<0.000000e+00> : vector<8xf32>
    %11 = vector.multi_reduction <add>, %10, %cst_7 [1] : vector<8x64xf32> to vector<8xf32>
    %12 = vector.shape_cast %11 : vector<8xf32> to vector<8x1xf32>
    %cst_8 = arith.constant 6.400000e+01 : f32
    %13 = vector.broadcast %cst_8 : f32 to vector<8x1xf32>
    %14 = arith.divf %12, %13 : vector<8x1xf32>
    %15 = vector.broadcast %7 : vector<8x1xf32> to vector<8x64xf32>
    %16 = arith.subf %1, %15 : vector<8x64xf32>
    %cst_9 = arith.constant 9.99999974E-6 : f32
    %17 = vector.broadcast %cst_9 : f32 to vector<8x1xf32>
    %18 = arith.addf %14, %17 : vector<8x1xf32>
    %19 = math.rsqrt %18 : vector<8x1xf32>
    %20 = vector.broadcast %19 : vector<8x1xf32> to vector<8x64xf32>
    %21 = arith.mulf %16, %20 : vector<8x64xf32>
    %22 = vector.broadcast %2 : vector<1x64xf32> to vector<8x64xf32>
    %23 = arith.mulf %21, %22 : vector<8x64xf32>
    %24 = vector.broadcast %3 : vector<1x64xf32> to vector<8x64xf32>
    %25 = arith.addf %23, %24 : vector<8x64xf32>
    %26 = arith.truncf %25 : vector<8x64xf32> to vector<8x64xbf16>
    %c0_10 = arith.constant 0 : index
    %c0_11 = arith.constant 0 : index
    %27 = vector.load %arg4[%c0_10, %c0_11] : memref<64x192xbf16, #tpu.memory_space<vmem>>, vector<64x192xbf16>
    %cst_12 = arith.constant dense<0.000000e+00> : vector<8x192xf32>
    %28 = tpu.matmul %26, %27, %cst_12 {dimension_numbers = #tpu.dot_dimension_numbers<[1], [0], [0], [1], [0, 0, 1, 1], [], []>} : vector<8x64xbf16>, vector<64x192xbf16>, vector<8x192xf32> -> vector<8x192xf32>
    %c0_13 = arith.constant 0 : index
    %c0_14 = arith.constant 0 : index
    %29 = vector.load %arg5[%c0_13, %c0_14] : memref<1x192xf32, #tpu.memory_space<vmem>>, vector<1x192xf32>
    %30 = vector.broadcast %29 : vector<1x192xf32> to vector<8x192xf32>
    %31 = arith.addf %28, %30 : vector<8x192xf32>
    %32 = tpu.iota {dimensions = array<i32: 0>} : vector<8x8xi32>
    %33 = tpu.iota {dimensions = array<i32: 1>} : vector<8x8xi32>
    %34 = arith.cmpi sge, %32, %33 : vector<8x8xi32>
    %35 = vector.extract_strided_slice %31 {offsets = [0, 0], sizes = [8, 16], strides = [1, 1]} : vector<8x192xf32> to vector<8x16xf32>
    %36 = arith.truncf %35 : vector<8x16xf32> to vector<8x16xbf16>
    %37 = vector.extract_strided_slice %31 {offsets = [0, 64], sizes = [8, 16], strides = [1, 1]} : vector<8x192xf32> to vector<8x16xf32>
    %38 = arith.truncf %37 : vector<8x16xf32> to vector<8x16xbf16>
    %39 = vector.extract_strided_slice %31 {offsets = [0, 128], sizes = [8, 16], strides = [1, 1]} : vector<8x192xf32> to vector<8x16xf32>
    %40 = arith.truncf %39 : vector<8x16xf32> to vector<8x16xbf16>
    %cst_15 = arith.constant dense<0.000000e+00> : vector<8x8xf32>
    %41 = tpu.matmul %36, %38, %cst_15 {dimension_numbers = #tpu.dot_dimension_numbers<[1], [1], [0], [0], [0, 0, 1, 0], [], []>} : vector<8x16xbf16>, vector<8x16xbf16>, vector<8x8xf32> -> vector<8x8xf32>
    %cst_16 = arith.constant -1.000000e+30 : f32
    %42 = vector.broadcast %cst_16 : f32 to vector<8x8xf32>
    %43 = arith.select %34, %41, %42 : vector<8x8xi1>, vector<8x8xf32>
    %cst_17 = arith.constant dense<0xFF800000> : vector<8xf32>
    %44 = vector.multi_reduction <maximumf>, %43, %cst_17 [1] : vector<8x8xf32> to vector<8xf32>
    %45 = vector.shape_cast %44 : vector<8xf32> to vector<8x1xf32>
    %46 = vector.broadcast %45 : vector<8x1xf32> to vector<8x8xf32>
    %47 = arith.subf %43, %46 : vector<8x8xf32>
    %48 = math.exp %47 : vector<8x8xf32>
    %cst_18 = arith.constant dense<0.000000e+00> : vector<8xf32>
    %49 = vector.multi_reduction <add>, %48, %cst_18 [1] : vector<8x8xf32> to vector<8xf32>
    %50 = vector.shape_cast %49 : vector<8xf32> to vector<8x1xf32>
    %51 = tpu.reciprocal %50 {approx = true} : vector<8x1xf32> -> vector<8x1xf32>
    %52 = vector.broadcast %51 : vector<8x1xf32> to vector<8x8xf32>
    %53 = arith.mulf %48, %52 : vector<8x8xf32>
    %54 = arith.truncf %53 : vector<8x8xf32> to vector<8x8xbf16>
    %cst_19 = arith.constant dense<0.000000e+00> : vector<8x16xf32>
    %55 = tpu.matmul %54, %40, %cst_19 {dimension_numbers = #tpu.dot_dimension_numbers<[1], [0], [0], [1], [0, 0, 1, 1], [], []>} : vector<8x8xbf16>, vector<8x16xbf16>, vector<8x16xf32> -> vector<8x16xf32>
    %56 = arith.truncf %55 : vector<8x16xf32> to vector<8x16xbf16>
    %c0_20 = arith.constant 0 : index
    %c0_21 = arith.constant 0 : index
    %57 = vector.load %arg15[%c0_20, %c0_21] : memref<8x64xbf16, #tpu.memory_space<vmem>>, vector<8x16xbf16>
    tpu.vector_store %arg15[%c0_20, %c0_21], %56 {strides = array<i32>} : memref<8x64xbf16, #tpu.memory_space<vmem>>, vector<8x16xbf16>,
    %58 = vector.extract_strided_slice %31 {offsets = [0, 16], sizes = [8, 16], strides = [1, 1]} : vector<8x192xf32> to vector<8x16xf32>
    %59 = arith.truncf %58 : vector<8x16xf32> to vector<8x16xbf16>
    %60 = vector.extract_strided_slice %31 {offsets = [0, 80], sizes = [8, 16], strides = [1, 1]} : vector<8x192xf32> to vector<8x16xf32>
    %61 = arith.truncf %60 : vector<8x16xf32> to vector<8x16xbf16>
    %62 = vector.extract_strided_slice %31 {offsets = [0, 144], sizes = [8, 16], strides = [1, 1]} : vector<8x192xf32> to vector<8x16xf32>
    %63 = arith.truncf %62 : vector<8x16xf32> to vector<8x16xbf16>
    %cst_22 = arith.constant dense<0.000000e+00> : vector<8x8xf32>
    %64 = tpu.matmul %59, %61, %cst_22 {dimension_numbers = #tpu.dot_dimension_numbers<[1], [1], [0], [0], [0, 0, 1, 0], [], []>} : vector<8x16xbf16>, vector<8x16xbf16>, vector<8x8xf32> -> vector<8x8xf32>
    %cst_23 = arith.constant -1.000000e+30 : f32
    %65 = vector.broadcast %cst_23 : f32 to vector<8x8xf32>
    %66 = arith.select %34, %64, %65 : vector<8x8xi1>, vector<8x8xf32>
    %cst_24 = arith.constant dense<0xFF800000> : vector<8xf32>
    %67 = vector.multi_reduction <maximumf>, %66, %cst_24 [1] : vector<8x8xf32> to vector<8xf32>
    %68 = vector.shape_cast %67 : vector<8xf32> to vector<8x1xf32>
    %69 = vector.broadcast %68 : vector<8x1xf32> to vector<8x8xf32>
    %70 = arith.subf %66, %69 : vector<8x8xf32>
    %71 = math.exp %70 : vector<8x8xf32>
    %cst_25 = arith.constant dense<0.000000e+00> : vector<8xf32>
    %72 = vector.multi_reduction <add>, %71, %cst_25 [1] : vector<8x8xf32> to vector<8xf32>
    %73 = vector.shape_cast %72 : vector<8xf32> to vector<8x1xf32>
    %74 = tpu.reciprocal %73 {approx = true} : vector<8x1xf32> -> vector<8x1xf32>
    %75 = vector.broadcast %74 : vector<8x1xf32> to vector<8x8xf32>
    %76 = arith.mulf %71, %75 : vector<8x8xf32>
    %77 = arith.truncf %76 : vector<8x8xf32> to vector<8x8xbf16>
    %cst_26 = arith.constant dense<0.000000e+00> : vector<8x16xf32>
    %78 = tpu.matmul %77, %63, %cst_26 {dimension_numbers = #tpu.dot_dimension_numbers<[1], [0], [0], [1], [0, 0, 1, 1], [], []>} : vector<8x8xbf16>, vector<8x16xbf16>, vector<8x16xf32> -> vector<8x16xf32>
    %79 = arith.truncf %78 : vector<8x16xf32> to vector<8x16xbf16>
    %c0_27 = arith.constant 0 : index
    %c16 = arith.constant 16 : index
    %80 = vector.load %arg15[%c0_27, %c16] : memref<8x64xbf16, #tpu.memory_space<vmem>>, vector<8x16xbf16>
    tpu.vector_store %arg15[%c0_27, %c16], %79 {strides = array<i32>} : memref<8x64xbf16, #tpu.memory_space<vmem>>, vector<8x16xbf16>,
    %81 = vector.extract_strided_slice %31 {offsets = [0, 32], sizes = [8, 16], strides = [1, 1]} : vector<8x192xf32> to vector<8x16xf32>
    %82 = arith.truncf %81 : vector<8x16xf32> to vector<8x16xbf16>
    %83 = vector.extract_strided_slice %31 {offsets = [0, 96], sizes = [8, 16], strides = [1, 1]} : vector<8x192xf32> to vector<8x16xf32>
    %84 = arith.truncf %83 : vector<8x16xf32> to vector<8x16xbf16>
    %85 = vector.extract_strided_slice %31 {offsets = [0, 160], sizes = [8, 16], strides = [1, 1]} : vector<8x192xf32> to vector<8x16xf32>
    %86 = arith.truncf %85 : vector<8x16xf32> to vector<8x16xbf16>
    %cst_28 = arith.constant dense<0.000000e+00> : vector<8x8xf32>
    %87 = tpu.matmul %82, %84, %cst_28 {dimension_numbers = #tpu.dot_dimension_numbers<[1], [1], [0], [0], [0, 0, 1, 0], [], []>} : vector<8x16xbf16>, vector<8x16xbf16>, vector<8x8xf32> -> vector<8x8xf32>
    %cst_29 = arith.constant -1.000000e+30 : f32
    %88 = vector.broadcast %cst_29 : f32 to vector<8x8xf32>
    %89 = arith.select %34, %87, %88 : vector<8x8xi1>, vector<8x8xf32>
    %cst_30 = arith.constant dense<0xFF800000> : vector<8xf32>
    %90 = vector.multi_reduction <maximumf>, %89, %cst_30 [1] : vector<8x8xf32> to vector<8xf32>
    %91 = vector.shape_cast %90 : vector<8xf32> to vector<8x1xf32>
    %92 = vector.broadcast %91 : vector<8x1xf32> to vector<8x8xf32>
    %93 = arith.subf %89, %92 : vector<8x8xf32>
    %94 = math.exp %93 : vector<8x8xf32>
    %cst_31 = arith.constant dense<0.000000e+00> : vector<8xf32>
    %95 = vector.multi_reduction <add>, %94, %cst_31 [1] : vector<8x8xf32> to vector<8xf32>
    %96 = vector.shape_cast %95 : vector<8xf32> to vector<8x1xf32>
    %97 = tpu.reciprocal %96 {approx = true} : vector<8x1xf32> -> vector<8x1xf32>
    %98 = vector.broadcast %97 : vector<8x1xf32> to vector<8x8xf32>
    %99 = arith.mulf %94, %98 : vector<8x8xf32>
    %100 = arith.truncf %99 : vector<8x8xf32> to vector<8x8xbf16>
    %cst_32 = arith.constant dense<0.000000e+00> : vector<8x16xf32>
    %101 = tpu.matmul %100, %86, %cst_32 {dimension_numbers = #tpu.dot_dimension_numbers<[1], [0], [0], [1], [0, 0, 1, 1], [], []>} : vector<8x8xbf16>, vector<8x16xbf16>, vector<8x16xf32> -> vector<8x16xf32>
    %102 = arith.truncf %101 : vector<8x16xf32> to vector<8x16xbf16>
    %c0_33 = arith.constant 0 : index
    %c32 = arith.constant 32 : index
    %103 = vector.load %arg15[%c0_33, %c32] : memref<8x64xbf16, #tpu.memory_space<vmem>>, vector<8x16xbf16>
    tpu.vector_store %arg15[%c0_33, %c32], %102 {strides = array<i32>} : memref<8x64xbf16, #tpu.memory_space<vmem>>, vector<8x16xbf16>,
    %104 = vector.extract_strided_slice %31 {offsets = [0, 48], sizes = [8, 16], strides = [1, 1]} : vector<8x192xf32> to vector<8x16xf32>
    %105 = arith.truncf %104 : vector<8x16xf32> to vector<8x16xbf16>
    %106 = vector.extract_strided_slice %31 {offsets = [0, 112], sizes = [8, 16], strides = [1, 1]} : vector<8x192xf32> to vector<8x16xf32>
    %107 = arith.truncf %106 : vector<8x16xf32> to vector<8x16xbf16>
    %108 = vector.extract_strided_slice %31 {offsets = [0, 176], sizes = [8, 16], strides = [1, 1]} : vector<8x192xf32> to vector<8x16xf32>
    %109 = arith.truncf %108 : vector<8x16xf32> to vector<8x16xbf16>
    %cst_34 = arith.constant dense<0.000000e+00> : vector<8x8xf32>
    %110 = tpu.matmul %105, %107, %cst_34 {dimension_numbers = #tpu.dot_dimension_numbers<[1], [1], [0], [0], [0, 0, 1, 0], [], []>} : vector<8x16xbf16>, vector<8x16xbf16>, vector<8x8xf32> -> vector<8x8xf32>
    %cst_35 = arith.constant -1.000000e+30 : f32
    %111 = vector.broadcast %cst_35 : f32 to vector<8x8xf32>
    %112 = arith.select %34, %110, %111 : vector<8x8xi1>, vector<8x8xf32>
    %cst_36 = arith.constant dense<0xFF800000> : vector<8xf32>
    %113 = vector.multi_reduction <maximumf>, %112, %cst_36 [1] : vector<8x8xf32> to vector<8xf32>
    %114 = vector.shape_cast %113 : vector<8xf32> to vector<8x1xf32>
    %115 = vector.broadcast %114 : vector<8x1xf32> to vector<8x8xf32>
    %116 = arith.subf %112, %115 : vector<8x8xf32>
    %117 = math.exp %116 : vector<8x8xf32>
    %cst_37 = arith.constant dense<0.000000e+00> : vector<8xf32>
    %118 = vector.multi_reduction <add>, %117, %cst_37 [1] : vector<8x8xf32> to vector<8xf32>
    %119 = vector.shape_cast %118 : vector<8xf32> to vector<8x1xf32>
    %120 = tpu.reciprocal %119 {approx = true} : vector<8x1xf32> -> vector<8x1xf32>
    %121 = vector.broadcast %120 : vector<8x1xf32> to vector<8x8xf32>
    %122 = arith.mulf %117, %121 : vector<8x8xf32>
    %123 = arith.truncf %122 : vector<8x8xf32> to vector<8x8xbf16>
    %cst_38 = arith.constant dense<0.000000e+00> : vector<8x16xf32>
    %124 = tpu.matmul %123, %109, %cst_38 {dimension_numbers = #tpu.dot_dimension_numbers<[1], [0], [0], [1], [0, 0, 1, 1], [], []>} : vector<8x8xbf16>, vector<8x16xbf16>, vector<8x16xf32> -> vector<8x16xf32>
    %125 = arith.truncf %124 : vector<8x16xf32> to vector<8x16xbf16>
    %c0_39 = arith.constant 0 : index
    %c48 = arith.constant 48 : index
    %126 = vector.load %arg15[%c0_39, %c48] : memref<8x64xbf16, #tpu.memory_space<vmem>>, vector<8x16xbf16>
    tpu.vector_store %arg15[%c0_39, %c48], %125 {strides = array<i32>} : memref<8x64xbf16, #tpu.memory_space<vmem>>, vector<8x16xbf16>,
    %c0_40 = arith.constant 0 : index
    %c0_41 = arith.constant 0 : index
    %127 = vector.load %arg15[%c0_40, %c0_41] : memref<8x64xbf16, #tpu.memory_space<vmem>>, vector<8x64xbf16>
    %c0_42 = arith.constant 0 : index
    %c0_43 = arith.constant 0 : index
    %128 = vector.load %arg6[%c0_42, %c0_43] : memref<64x64xbf16, #tpu.memory_space<vmem>>, vector<64x64xbf16>
    %cst_44 = arith.constant dense<0.000000e+00> : vector<8x64xf32>
    %129 = tpu.matmul %127, %128, %cst_44 {dimension_numbers = #tpu.dot_dimension_numbers<[1], [0], [0], [1], [0, 0, 1, 1], [], []>} : vector<8x64xbf16>, vector<64x64xbf16>, vector<8x64xf32> -> vector<8x64xf32>
    %c0_45 = arith.constant 0 : index
    %c0_46 = arith.constant 0 : index
    %130 = vector.load %arg7[%c0_45, %c0_46] : memref<1x64xf32, #tpu.memory_space<vmem>>, vector<1x64xf32>
    %131 = vector.broadcast %130 : vector<1x64xf32> to vector<8x64xf32>
    %132 = arith.addf %129, %131 : vector<8x64xf32>
    %133 = arith.addf %1, %132 : vector<8x64xf32>
    %c0_47 = arith.constant 0 : index
    %c0_48 = arith.constant 0 : index
    %134 = vector.load %arg8[%c0_47, %c0_48] : memref<1x64xf32, #tpu.memory_space<vmem>>, vector<1x64xf32>
    %c0_49 = arith.constant 0 : index
    %c0_50 = arith.constant 0 : index
    %135 = vector.load %arg9[%c0_49, %c0_50] : memref<1x64xf32, #tpu.memory_space<vmem>>, vector<1x64xf32>
    %cst_51 = arith.constant dense<0.000000e+00> : vector<8xf32>
    %136 = vector.multi_reduction <add>, %133, %cst_51 [1] : vector<8x64xf32> to vector<8xf32>
    %137 = vector.shape_cast %136 : vector<8xf32> to vector<8x1xf32>
    %cst_52 = arith.constant 6.400000e+01 : f32
    %138 = vector.broadcast %cst_52 : f32 to vector<8x1xf32>
    %139 = arith.divf %137, %138 : vector<8x1xf32>
    %140 = vector.broadcast %139 : vector<8x1xf32> to vector<8x64xf32>
    %141 = arith.subf %133, %140 : vector<8x64xf32>
    %142 = arith.mulf %141, %141 : vector<8x64xf32>
    %cst_53 = arith.constant dense<0.000000e+00> : vector<8xf32>
    %143 = vector.multi_reduction <add>, %142, %cst_53 [1] : vector<8x64xf32> to vector<8xf32>
    %144 = vector.shape_cast %143 : vector<8xf32> to vector<8x1xf32>
    %cst_54 = arith.constant 6.400000e+01 : f32
    %145 = vector.broadcast %cst_54 : f32 to vector<8x1xf32>
    %146 = arith.divf %144, %145 : vector<8x1xf32>
    %147 = vector.broadcast %139 : vector<8x1xf32> to vector<8x64xf32>
    %148 = arith.subf %133, %147 : vector<8x64xf32>
    %cst_55 = arith.constant 9.99999974E-6 : f32
    %149 = vector.broadcast %cst_55 : f32 to vector<8x1xf32>
    %150 = arith.addf %146, %149 : vector<8x1xf32>
    %151 = math.rsqrt %150 : vector<8x1xf32>
    %152 = vector.broadcast %151 : vector<8x1xf32> to vector<8x64xf32>
    %153 = arith.mulf %148, %152 : vector<8x64xf32>
    %154 = vector.broadcast %134 : vector<1x64xf32> to vector<8x64xf32>
    %155 = arith.mulf %153, %154 : vector<8x64xf32>
    %156 = vector.broadcast %135 : vector<1x64xf32> to vector<8x64xf32>
    %157 = arith.addf %155, %156 : vector<8x64xf32>
    %158 = arith.truncf %157 : vector<8x64xf32> to vector<8x64xbf16>
    %c0_56 = arith.constant 0 : index
    %c0_57 = arith.constant 0 : index
    %159 = vector.load %arg10[%c0_56, %c0_57] : memref<64x256xbf16, #tpu.memory_space<vmem>>, vector<64x256xbf16>
    %cst_58 = arith.constant dense<0.000000e+00> : vector<8x256xf32>
    %160 = tpu.matmul %158, %159, %cst_58 {dimension_numbers = #tpu.dot_dimension_numbers<[1], [0], [0], [1], [0, 0, 1, 1], [], []>} : vector<8x64xbf16>, vector<64x256xbf16>, vector<8x256xf32> -> vector<8x256xf32>
    %c0_59 = arith.constant 0 : index
    %c0_60 = arith.constant 0 : index
    %161 = vector.load %arg11[%c0_59, %c0_60] : memref<1x256xf32, #tpu.memory_space<vmem>>, vector<1x256xf32>
    %162 = vector.broadcast %161 : vector<1x256xf32> to vector<8x256xf32>
    %163 = arith.addf %160, %162 : vector<8x256xf32>
    %cst_61 = arith.constant 5.000000e-01 : f32
    %164 = vector.broadcast %cst_61 : f32 to vector<8x256xf32>
    %165 = arith.mulf %164, %163 : vector<8x256xf32>
    %166 = arith.mulf %163, %163 : vector<8x256xf32>
    %167 = arith.mulf %166, %163 : vector<8x256xf32>
    %cst_62 = arith.constant 4.471500e-02 : f32
    %168 = vector.broadcast %cst_62 : f32 to vector<8x256xf32>
    %169 = arith.mulf %168, %167 : vector<8x256xf32>
    %170 = arith.addf %163, %169 : vector<8x256xf32>
    %cst_63 = arith.constant 0.797884583 : f32
    %171 = vector.broadcast %cst_63 : f32 to vector<8x256xf32>
    %172 = arith.mulf %171, %170 : vector<8x256xf32>
    %173 = math.tanh %172 : vector<8x256xf32>
    %cst_64 = arith.constant 1.000000e+00 : f32
    %174 = vector.broadcast %cst_64 : f32 to vector<8x256xf32>
    %175 = arith.addf %174, %173 : vector<8x256xf32>
    %176 = arith.mulf %165, %175 : vector<8x256xf32>
    %177 = arith.truncf %176 : vector<8x256xf32> to vector<8x256xbf16>
    %c0_65 = arith.constant 0 : index
    %c0_66 = arith.constant 0 : index
    %178 = vector.load %arg12[%c0_65, %c0_66] : memref<256x64xbf16, #tpu.memory_space<vmem>>, vector<256x64xbf16>
    %cst_67 = arith.constant dense<0.000000e+00> : vector<8x64xf32>
    %179 = tpu.matmul %177, %178, %cst_67 {dimension_numbers = #tpu.dot_dimension_numbers<[1], [0], [0], [1], [0, 0, 1, 1], [], []>} : vector<8x256xbf16>, vector<256x64xbf16>, vector<8x64xf32> -> vector<8x64xf32>
    %c0_68 = arith.constant 0 : index
    %c0_69 = arith.constant 0 : index
    %180 = vector.load %arg13[%c0_68, %c0_69] : memref<1x64xf32, #tpu.memory_space<vmem>>, vector<1x64xf32>
    %181 = vector.broadcast %180 : vector<1x64xf32> to vector<8x64xf32>
    %182 = arith.addf %179, %181 : vector<8x64xf32>
    %183 = arith.addf %133, %182 : vector<8x64xf32>
    %c0_70 = arith.constant 0 : index
    %c0_71 = arith.constant 0 : index
    %c0_72 = arith.constant 0 : index
    %184 = vector.load %arg14[%c0_70, %c0_71, %c0_72] : memref<1x8x64xf32, #tpu.memory_space<vmem>>, vector<1x8x64xf32>
    %185 = vector.shape_cast %184 : vector<1x8x64xf32> to vector<8x64xf32>
    %186 = vector.shape_cast %183 : vector<8x64xf32> to vector<1x8x64xf32>
    tpu.vector_store %arg14[%c0_70, %c0_71, %c0_72], %186 {strides = array<i32>} : memref<1x8x64xf32, #tpu.memory_space<vmem>>, vector<1x8x64xf32>,
    return
  }
  func.func @transform_0(%arg0: i32) -> (i32, i32, i32) {
    %c0_i32 = arith.constant 0 : i32
    %c0_i32_0 = arith.constant 0 : i32
    %c0_i32_1 = arith.constant 0 : i32
    return %arg0, %c0_i32, %c0_i32_0 : i32, i32, i32
  }
  func.func @transform_1(%arg0: i32) -> (i32, i32) {
    %c0_i32 = arith.constant 0 : i32
    %c0_i32_0 = arith.constant 0 : i32
    %c0_i32_1 = arith.constant 0 : i32
    return %c0_i32, %c0_i32_0 : i32, i32
  }
  func.func @transform_2(%arg0: i32) -> (i32, i32) {
    %c0_i32 = arith.constant 0 : i32
    %c0_i32_0 = arith.constant 0 : i32
    %c0_i32_1 = arith.constant 0 : i32
    return %c0_i32, %c0_i32_0 : i32, i32
  }
  func.func @transform_3(%arg0: i32) -> (i32, i32) {
    %c0_i32 = arith.constant 0 : i32
    %c0_i32_0 = arith.constant 0 : i32
    %c0_i32_1 = arith.constant 0 : i32
    return %c0_i32, %c0_i32_0 : i32, i32
  }
  func.func @transform_4(%arg0: i32) -> (i32, i32) {
    %c0_i32 = arith.constant 0 : i32
    %c0_i32_0 = arith.constant 0 : i32
    %c0_i32_1 = arith.constant 0 : i32
    return %c0_i32, %c0_i32_0 : i32, i32
  }
  func.func @transform_5(%arg0: i32) -> (i32, i32) {
    %c0_i32 = arith.constant 0 : i32
    %c0_i32_0 = arith.constant 0 : i32
    %c0_i32_1 = arith.constant 0 : i32
    return %c0_i32, %c0_i32_0 : i32, i32
  }
  func.func @transform_6(%arg0: i32) -> (i32, i32) {
    %c0_i32 = arith.constant 0 : i32
    %c0_i32_0 = arith.constant 0 : i32
    %c0_i32_1 = arith.constant 0 : i32
    return %c0_i32, %c0_i32_0 : i32, i32
  }
  func.func @transform_7(%arg0: i32) -> (i32, i32) {
    %c0_i32 = arith.constant 0 : i32
    %c0_i32_0 = arith.constant 0 : i32
    %c0_i32_1 = arith.constant 0 : i32
    return %c0_i32, %c0_i32_0 : i32, i32
  }
  func.func @transform_8(%arg0: i32) -> (i32, i32) {
    %c0_i32 = arith.constant 0 : i32
    %c0_i32_0 = arith.constant 0 : i32
    %c0_i32_1 = arith.constant 0 : i32
    return %c0_i32, %c0_i32_0 : i32, i32
  }
  func.func @transform_9(%arg0: i32) -> (i32, i32) {
    %c0_i32 = arith.constant 0 : i32
    %c0_i32_0 = arith.constant 0 : i32
    %c0_i32_1 = arith.constant 0 : i32
    return %c0_i32, %c0_i32_0 : i32, i32
  }
  func.func @transform_10(%arg0: i32) -> (i32, i32) {
    %c0_i32 = arith.constant 0 : i32
    %c0_i32_0 = arith.constant 0 : i32
    %c0_i32_1 = arith.constant 0 : i32
    return %c0_i32, %c0_i32_0 : i32, i32
  }
  func.func @transform_11(%arg0: i32) -> (i32, i32) {
    %c0_i32 = arith.constant 0 : i32
    %c0_i32_0 = arith.constant 0 : i32
    %c0_i32_1 = arith.constant 0 : i32
    return %c0_i32, %c0_i32_0 : i32, i32
  }
  func.func @transform_12(%arg0: i32) -> (i32, i32) {
    %c0_i32 = arith.constant 0 : i32
    %c0_i32_0 = arith.constant 0 : i32
    %c0_i32_1 = arith.constant 0 : i32
    return %c0_i32, %c0_i32_0 : i32, i32
  }
  func.func @transform_13(%arg0: i32) -> (i32, i32, i32) {
    %c0_i32 = arith.constant 0 : i32
    %c0_i32_0 = arith.constant 0 : i32
    %c0_i32_1 = arith.constant 0 : i32
    return %arg0, %c0_i32, %c0_i32_0 : i32, i32, i32
  }
}

</mosaic_0001>

<bundles_post_ra>
// kernel: tpu_custom_call.1
= control target key start
LH: loop header
LB: loop body
LE: loop exit
PB: predicated region body
PF: predicated region fallthrough
CT: control target
= control target key end

     0   :  { %s2325_s0 = inlined_call_operand.vmem [shape: f32[2,8,64], index: 0, kind: input, shape index: {}]   ;;  %s2326_s1 = inlined_call_operand.vmem [shape: f32[1,64], index: 1, kind: input, shape index: {}]   ;;  %s2327_s2 = inlined_call_operand.vmem [shape: f32[1,64], index: 2, kind: input, shape index: {}]   ;;  %s2328_s3 = inlined_call_operand.vmem [shape: bf16[64,192], index: 3, kind: input, shape index: {}]   ;;  %s2329_s4 = inlined_call_operand.vmem [shape: f32[1,192], index: 4, kind: input, shape index: {}]   ;;  %s2330_s5 = inlined_call_operand.vmem [shape: bf16[64,64], index: 5, kind: input, shape index: {}]   ;;  %s2331_s6 = inlined_call_operand.vmem [shape: f32[1,64], index: 6, kind: input, shape index: {}]   ;;  %s2332_s7 = inlined_call_operand.vmem [shape: f32[1,64], index: 7, kind: input, shape index: {}]   ;;  %s2333_s8 = inlined_call_operand.vmem [shape: f32[1,64], index: 8, kind: input, shape index: {}]   ;;  %s2334_s9 = inlined_call_operand.vmem [shape: bf16[64,256], index: 9, kind: input, shape index: {}]   ;;  %s2335_s10 = inlined_call_operand.vmem [shape: f32[1,256], index: 10, kind: input, shape index: {}]   ;;  %s2336_s11 = inlined_call_operand.vmem [shape: bf16[256,64], index: 11, kind: input, shape index: {}]   ;;  %s2337_s12 = inlined_call_operand.vmem [shape: f32[1,64], index: 12, kind: input, shape index: {}]   ;;  %s2338_s13 = inlined_call_operand.hbm [shape: f32[2,8,64], index: 13, kind: output, shape index: {}]  }
   0x1   :  { %2341 = sst [smem:[#allocation6_spill]] %s2325_s0 }
   0x2   :  { %2342 = sst [smem:[#allocation7_spill]] %s2326_s1 }
   0x3   :  { %2343 = sst [smem:[#allocation8_spill]] %s2327_s2 }
   0x4   :  { %18 = vsyncpa [#allocation4], 0 }
   0x5   :  { %20 = vsyncpa [#allocation4 + $0x1], 0  ;;  %s1978_s25 = smov 0   ;;  %s1980_s26 = smov 0  }
   0x6   :  { %s1982_s27 = smov 0   ;;  %s1984_s28 = smov 0  }
   0x7 LB: > { %s1999_s29 = sadd.s32 4294967295, %s1895_s28   ;;  %s1544_s30 = sadd.s32 4294967294, %s1895_s28   ;;  %s1895_s28 = sphi %s1984_s28, %s2354_s28   ;;  %s1891_s27 = sphi %s1982_s27, %s2353_s27   ;;  %s1887_s26 = sphi %s1980_s26, %s2352_s26   ;;  %s1883_s25 = sphi %s1978_s25, %s2351_s25  }
   0x8   : > { %s2003_s14 = sadd.s32 1, %s1895_s28   ;;  %s311_s15 = sadd.s32 1, %s1891_s27 }
   0x9   : > { %s308_s16 = ssub.s32 %s1895_s28, %s2003_s14  ;;  %p321_p0 = scmp.ne.s32.totalorder %s1891_s27, %s1887_s26 }
   0xa   : > { %p309_p1 = scmp.eq.s32.totalorder %s308_s16, 0  ;;  %p322_p2 = scmp.eq.s32.totalorder %s1999_s29, 1 }
   0xb   : > { %p327_p3 = scmp.ne.s32.totalorder %s1887_s26, %s1883_s25  ;;  %p328_p4 = scmp.eq.s32.totalorder %s1544_s30, 1 }
   0xc   : > { %s2014_s17 = scalar_select %p309_p1, %s1891_s27, %s311_s15  }
   0xd   : > { %p2016_p5 = por %p322_p2, %p321_p0  ;;  %p2020_p6 = por %p328_p4, %p327_p3 }
   0xe   : > { %p1547_p7 = scmp.ge.s32.totalorder %s1895_s28, 1  ;;  %p389_p8 = scmp.lt.s32.totalorder %s1895_s28, 3 }
  0x10   : > { %p390_p9 = pnand %p1547_p7, %p389_p8 }
  0x11   : > { %p432_p10 = scmp.lt.s32.totalorder (!%p390_p9), %s1999_s29, 1  ;;  %vm440_vm0 = vcmask (!%p390_p9), 523264   ;;  %s2346_s0 = sld [smem:[#allocation6_spill]] (!%p390_p9)  ;;  %v1765_v7 = vld [vmem:[%s2328_s3 + $0x4] ss:$8 sps:$4 sm:$0xff] (!%p390_p9)   ;;  %v1897_v11 = vmov (!%p390_p9), 0   ;;  %v480_v26 = vlaneseq (!%p390_p9) }
  0x12   : > { %393 = sbr.rel (%p390_p9) target bundleno = 2618 (0xa3a), region = 72  ;;  %v1767_v8 = vld [vmem:[%s2328_s3] ss:$8 sps:$4 sm:$0xff] (!%p390_p9)   ;;  %v1768_v9 = vld [vmem:[%s2328_s3 + $0x14] ss:$8 sps:$4 sm:$0xff] (!%p390_p9)   ;;  %533 = vmatprep.subr.bf16.mxu1 (!%p390_p9), %v1765_v7  ;;  %565 = vmatprep.mubr.bf16.mxu1 (!%p390_p9), %v1897_v11  ;;  %s2347_s1 = sld [smem:[#allocation7_spill]] (!%p390_p9) }
  0x13   : > { %534 = vmatpush1.bf16.msra.mxu1 (!%p390_p9), %v1767_v8  ;;  %v1770_v10 = vld [vmem:[%s2328_s3 + $0x10] ss:$8 sps:$4 sm:$0xff] (!%p390_p9)   ;;  %v1771_v12 = vld [vmem:[%s2328_s3 + $0x24] ss:$8 sps:$4 sm:$0xff] (!%p390_p9)   ;;  %v1773_v13 = vld [vmem:[%s2328_s3 + $0x20] ss:$8 sps:$4 sm:$0xff] (!%p390_p9)  }
  0x14   : > { %535 = vmatprep.subr.bf16.mxu1 (!%p390_p9), %v1768_v9  ;;  %v1774_v14 = vld [vmem:[%s2328_s3 + $0x34] ss:$8 sps:$4 sm:$0xff] (!%p390_p9)   ;;  %v1776_v15 = vld [vmem:[%s2328_s3 + $0x30] ss:$8 sps:$4 sm:$0xff] (!%p390_p9)   ;;  %s2348_s2 = sld [smem:[#allocation8_spill]] (!%p390_p9)  ;;  %v2070_v27 = vshrl.u32 (!%p390_p9), %v480_v26, 7 }
  0x15   : > { %v1898_v28 = vmov (!%p390_p9), 0.0   ;;  %v478_v30 = vld [vmem:[%s2329_s4] sm:$0x3] (!%p390_p9)  ;;  %vm1899_vm1 = vmmov (!%p390_p9), 0   ;;  %s1900_s23 = smov (!%p390_p9), 112   ;;  %s2339_s30 = smov (!%p390_p9), 48  }
  0x16   : > { %1668 = vmatprep.subr.bf16.mxu0 (!%p390_p9), %v1898_v28  ;;  %v482_v29 = vsub.s32 (!%p390_p9), 0, %v2070_v27  ;;  %1670 = vmatprep.mubr.msk.bf16.mxu0 (!%p390_p9), %vm1899_vm1, %v1898_v28  ;;  %s2340_s15 = smov (!%p390_p9), 32   ;;  %s1904_s16 = smov (!%p390_p9), 96   ;;  %v486_v38 = vsub.s32 (!%p390_p9), 1, %v2070_v27  ;;  %vm584_vm2 = vcmask (!%p390_p9), 130048   ;;  %vm648_vm3 = vcmask (!%p390_p9), 1043456  }
  0x17   : > { %536 = vmatpush1.bf16.msra.mxu1 (!%p390_p9), %v1770_v10  ;;  %v577_v54 = vand.u32 (!%p390_p9), 127, %v480_v26  ;;  %vm632_vm5 = vcmask (!%p390_p9), 64512   ;;  %vm693_vm6 = vcmask (!%p390_p9), 125952   ;;  %s2349_s22 = smov (!%p390_p9), 32   ;;  %vm814_vm7 = vcmask (!%p390_p9), 257152  }
  0x18   : > { %537 = vmatprep.subr.bf16.mxu1 (!%p390_p9), %v1771_v12  ;;  %v1550_v20 = vld [vmem:[%s2347_s1] ss:$0 sm:$0xff] (!%p390_p9)  ;;  %v483_v31 = vrot.slane (!%p390_p9), %v478_v30, %v482_v29  ;;  %v487_v39 = vrot.slane (!%p390_p9), %v478_v30, %v486_v38  ;;  %vm934_vm8 = vcmask (!%p390_p9), 388352   ;;  %vm1054_vm9 = vcmask (!%p390_p9), 519552  }
  0x19   : > { %s433_s20 = scalar_select %p432_p10, %s1999_s29, 1  ;;  %vm578_vm4 = vcmp.ge.s32.totalorder %v2070_v27, %v577_v54 }
  0x1a   : > { %v1551_v22 = vld [vmem:[%s2348_s2] ss:$0 sm:$0xff] }
  0x1b   : > { %s1549_s21 = sshll.u32 %s433_s20, 3  ;;  %538 = vmatpush1.bf16.msra.mxu1 %v1773_v13  ;;  %s1905_s20 = smov 16  }
  0x1c   : > { %s435_s24 = scalar_lea.vmem %s2346_s0, %s1549_s21  ;;  %539 = vmatprep.subr.bf16.mxu1 %v1774_v14  ;;  %s1906_s21 = smov 80  }
  0x1d   : > { %v2031_v0 = vld [vmem:[%s435_s24] sm:$0xff]  ;;  %s1901_s24 = smov 64  }
  0x1e   : > { %v441_v1 = vsel %vm440_vm0, %v2031_v0, 0.0 }
  0x1f   : > { %442 = vadd.xlane.f32.xlu0 %v441_v1  ;;  %540 = vmatpush1.bf16.msra.mxu1 %v1776_v15 }
  0x20   : > { %1656 = vmatprep.subr.bf16.mxu1 %v1898_v28 }
  0xac   : > { %v443_v2 = vpop.xlane.xlu0 %442 }
  0xad   : > { %v445_v3 = vmul.f32 0.015625, %v443_v2 }
  0xaf   : > { %v446_v4 = vsub.f32 %v2031_v0, %v445_v3 }
  0xb1   : > { %v447_v5 = vmul.f32 %v446_v4, %v446_v4 }
  0xb3   : > { %v448_v6 = vsel %vm440_vm0, %v447_v5, 0.0 }
  0xb4   : > { %449 = vadd.xlane.f32.xlu0 %v448_v6 }
 0x141   : > { %v450_v16 = vpop.xlane.xlu0 %449 }
 0x142   : > { %v451_v17 = vmul.f32 0.015625, %v450_v16 }
 0x144   : > { %v452_v18 = vadd.f32 1e-05, %v451_v17 }
 0x146   : > { %1809 = vrsqrt.f32 %v452_v18 }
 0x150   : > { %v1810_v19 = vpop.eup %1809 }
 0x151   : > { %v454_v21 = vmul.f32 %v1810_v19, %v446_v4 }
 0x153   : > { %v461_v23 = vmul.f32 %v1550_v20, %v454_v21 }
 0x155   : > { %v468_v24 = vadd.f32 %v1551_v22, %v461_v23 }
 0x157   : > { %v469_v25 = vpack.c.bf16 %v468_v24, %v468_v24 }
 0x159   : > { %1560 = vmatmul.mubr.msk.bf16.vlgmr.msra.gmra.mrb[0].mxu1 %vm440_vm0, %v469_v25 }
 0x15a   : > { %1658 = vmatprep.mubr.msk.bf16.mxu1 %vm1899_vm1, %v1898_v28 }
 0x22c   : > { %v567_v32 = vpop.f32.mrb[0].mxu1 }
 0x22d   : > { %v568_v33 = vadd.f32 %v567_v32, %v483_v31  ;;  %v569_v34 = vpop.f32.mrb[1].mxu1 }
 0x22e   : > { %v571_v35 = vpop.f32.mrb[2].mxu1  ;;  %v570_v41 = vadd.f32 %v569_v34, %v487_v39 }
 0x22f   : > { %v579_v36 = vpack.c.bf16 %v568_v33, %v568_v33  ;;  %v572_v37 = vpop.f32.mrb[3].mxu1 }
 0x230   : > { %v2095_v44 = vpack.c.bf16 %v570_v41, %v570_v41 }
 0x231   : > { %695 = vrot.lane.b32.xlu0 %v579_v36, %s1900_s23  ;;  %582 = vrot.lane.b32.xlu1 %v579_v36, %s1901_s24 }
 0x232   : > { %v650_v47 = vsel %vm648_vm3, %v2095_v44, 0 }
 0x235   : > { %697 = vrot.lane.b32.xlu1 %v579_v36, %s2339_s30  ;;  %s2350_s30 = smov 48  }
 0x239   : > { %818 = vrot.lane.b32.xlu1 %v579_v36, %s2340_s15  ;;  %s1607_s15 = sshll.u32 %s1999_s29, 7  ;;  %s1907_s29 = smov [#allocation3]  }
 0x23d   : > { %816 = vrot.lane.b32.xlu1 %v579_v36, %s1904_s16 }
 0x241   : > { %938 = vrot.lane.b32.xlu1 %v579_v36, %s1905_s20 }
 0x245   : > { %936 = vrot.lane.b32.xlu1 %v579_v36, %s1906_s21 }
 0x2a3   : > { %v583_v40 = vpop.permute.xlu1 %582  ;;  %v696_v48 = vpop.permute.xlu0 %695 }
 0x2a4   : > { %v589_v42 = vsel %vm584_vm2, %v583_v40, 0 }
 0x2a5   : > { %1657 = vmatpush3.bf16.xpose.msra.mxu1 %v589_v42 }
 0x2a6   : > { %1662 = vmatprep.subr.bf16.mxu1 %v1898_v28 }
 0x2a7   : > { %v698_v43 = vpop.permute.xlu1 %697 }
 0x2a8   : > { %v703_v45 = vsel %vm584_vm2, %v698_v43, 0 }
 0x2a9   : > { %1669 = vmatpush3.bf16.xpose.msra.mxu0 %v703_v45 }
 0x2aa   : > { %1680 = vmatprep.subr.bf16.mxu0 %v1898_v28 }
 0x2ab   : > { %v819_v46 = vpop.permute.xlu1 %818 }
 0x2ac   : > { %1659 = vmatmul.mubr.msk.bf16.vlgmr.msra.gmra.mrb[4].mxu1 %vm584_vm2, %v579_v36  ;;  %v824_v50 = vsel %vm584_vm2, %v819_v46, 0 }
 0x2ad   : > { %1663 = vmatpush3.bf16.msra.mxu1 %v650_v47  ;;  %1664 = vmatprep.mubr.msk.bf16.mxu1 %vm1899_vm1, %v1898_v28 }
 0x2ae   : > { %1674 = vmatprep.subr.bf16.mxu1 %v1898_v28 }
 0x2af   : > { %v817_v49 = vpop.permute.xlu1 %816 }
 0x2b0   : > { %1671 = vmatmul.mubr.msk.bf16.vlgmr.msra.gmra.mrb[0].mxu0 %vm584_vm2, %v696_v48 }
 0x2b1   : > { %1681 = vmatpush3.bf16.xpose.msra.mxu0 %v824_v50  ;;  %1682 = vmatprep.mubr.msk.bf16.mxu0 %vm1899_vm1, %v1898_v28 }
 0x2b2   : > { %1692 = vmatprep.subr.bf16.mxu0 %v1898_v28 }
 0x2b3   : > { %v939_v51 = vpop.permute.xlu1 %938 }
 0x2b4   : > { %v944_v52 = vsel %vm584_vm2, %v939_v51, 0 }
 0x2b7   : > { %v937_v53 = vpop.permute.xlu1 %936 }
 0x2b8   : > { %1683 = vmatmul.mubr.msk.bf16.vlgmr.msra.gmra.mrb[4].mxu0 %vm584_vm2, %v817_v49 }
 0x2b9   : > { %1693 = vmatpush3.bf16.xpose.msra.mxu0 %v944_v52  ;;  %1694 = vmatprep.mubr.msk.bf16.mxu0 %vm1899_vm1, %v1898_v28 }
 0x2ba   : > { %1704 = vmatprep.subr.bf16.mxu0 %v1898_v28 }
 0x2c0   : > { %1695 = vmatmul.mubr.msk.bf16.vlgmr.msra.gmra.mrb[8].mxu0 %vm584_vm2, %v937_v53 }
 0x2c1   : > { %1712 = vmatprep.mubr.msk.bf16.mxu0 %vm1899_vm1, %v1898_v28 }
 0x37f   : > { %v625_v55 = vpop.f32.mrb[4].mxu1 }
 0x380   : > { %v631_v56 = vsel %vm578_vm4, %v625_v55, -1e+30  ;;  %v1660_v57 = vpop.f32.mrb[5].mxu1 }
 0x381   : > { %v628_v58 = vpop.f32.mrb[6].mxu1  ;;  %v633_v59 = vsel %vm632_vm5, %v631_v56, -inf }
 0x382   : > { %634 = vmax.xlane.f32.xlu1 %v633_v59  ;;  %v1661_v60 = vpop.f32.mrb[7].mxu1 }
 0x383   : > { %v739_v61 = vpop.f32.mrb[0].mxu0 }
 0x384   : > { %v745_v62 = vsel %vm578_vm4, %v739_v61, -1e+30  ;;  %v1672_v63 = vpop.f32.mrb[1].mxu0 }
 0x385   : > { %v742_v1 = vpop.f32.mrb[2].mxu0  ;;  %v746_v2 = vsel %vm632_vm5, %v745_v62, -inf }
 0x386   : > { %747 = vmax.xlane.f32.xlu0 %v746_v2  ;;  %v1673_v3 = vpop.f32.mrb[3].mxu0 }
 0x38b   : > { %v860_v4 = vpop.f32.mrb[4].mxu0 }
 0x38c   : > { %v866_v5 = vsel %vm578_vm4, %v860_v4, -1e+30  ;;  %v1684_v6 = vpop.f32.mrb[5].mxu0 }
 0x38d   : > { %v863_v7 = vpop.f32.mrb[6].mxu0  ;;  %v867_v8 = vsel %vm632_vm5, %v866_v5, -inf }
 0x38e   : > { %868 = vmax.xlane.f32.xlu1 %v867_v8  ;;  %v1685_v9 = vpop.f32.mrb[7].mxu0 }
 0x393   : > { %v980_v10 = vpop.f32.mrb[8].mxu0 }
 0x394   : > { %v986_v12 = vsel %vm578_vm4, %v980_v10, -1e+30  ;;  %v1696_v13 = vpop.f32.mrb[9].mxu0  ;;  %v1777_v10 = vld [vmem:[%s2330_s5] sm:$0xff]  }
 0x395   : > { %v983_v14 = vpop.f32.mrb[10].mxu0  ;;  %v987_v15 = vsel %vm632_vm5, %v986_v12, -inf  ;;  %1705 = vmatpush3.bf16.msra.mxu0 %v1777_v10  ;;  %v1805_v10 = vld [vmem:[%s2336_s11 + $0x70] sm:$0xff]  }
 0x396   : > { %988 = vmax.xlane.f32.xlu0 %v987_v15  ;;  %v1697_v16 = vpop.f32.mrb[11].mxu0  ;;  %1706 = vmatprep.subr.bf16.mxu0 %v1898_v28  ;;  %v1780_v14 = vld [vmem:[%s2330_s5 + $0x18] sm:$0xff]  }
 0x40f   : > { %v635_v17 = vpop.xlane.xlu1 %634 }
 0x410   : > { %v636_v18 = vsub.f32 %v631_v56, %v635_v17 }
 0x412   : > { %v637_v19 = vmul.f32 1.442695, %v636_v18 }
 0x413   : > { %v748_v20 = vpop.xlane.xlu0 %747 }
 0x414   : > { %1811 = vpow2.f32 %v637_v19  ;;  %v749_v21 = vsub.f32 %v745_v62, %v748_v20 }
 0x416   : > { %v750_v22 = vmul.f32 1.442695, %v749_v21 }
 0x418   : > { %1813 = vpow2.f32 %v750_v22 }
 0x41b   : > { %v869_v35 = vpop.xlane.xlu1 %868 }
 0x41c   : > { %v870_v36 = vsub.f32 %v866_v5, %v869_v35 }
 0x41e   : > { %v1812_v23 = vpop.eup %1811  ;;  %v871_v37 = vmul.f32 1.442695, %v870_v36 }
 0x41f   : > { %v639_v24 = vsel %vm632_vm5, %v1812_v23, 0.0 }
 0x420   : > { %640 = vadd.xlane.f32.xlu1 %v639_v24 }
 0x422   : > { %v1814_v25 = vpop.eup %1813 }
 0x423   : > { %v989_v26 = vpop.xlane.xlu0 %988  ;;  %v752_v30 = vsel %vm632_vm5, %v1814_v25, 0.0 }
 0x424   : > { %v990_v31 = vsub.f32 %v986_v12, %v989_v26  ;;  %753 = vadd.xlane.f32.xlu0 %v752_v30  ;;  %v1779_v12 = vld [vmem:[%s2330_s5 + $0x10] sm:$0xff]   ;;  %v1572_v30 = vld [vmem:[%s2331_s6] ss:$0 sm:$0xff] }
 0x426   : > { %v991_v32 = vmul.f32 1.442695, %v990_v31 }
 0x428   : > { %1815 = vpow2.f32 %v991_v32 }
 0x429   : > { %1817 = vpow2.f32 %v871_v37 }
 0x431   : > { %759 = vrot.lane.b32.xlu1 %v2095_v44, %s1900_s23 }
 0x432   : > { %v1816_v33 = vpop.eup %1815 }
 0x433   : > { %v993_v34 = vsel %vm632_vm5, %v1816_v33, 0.0  ;;  %v1818_v39 = vpop.eup %1817 }
 0x434   : > { %994 = vadd.xlane.f32.xlu0 %v993_v34  ;;  %v873_v40 = vsel %vm632_vm5, %v1818_v39, 0.0 }
 0x44a   : > { %879 = vrot.lane.b32.xlu0 %v2095_v44, %s1904_s16 }
 0x455   : > { %874 = vadd.xlane.f32.xlu1 %v873_v40 }
 0x466   : > { %999 = vrot.lane.b32.xlu1 %v2095_v44, %s1906_s21 }
 0x4ad   : > { %v641_v41 = vpop.xlane.xlu1 %640 }
 0x4ae   : > { %1819 = vrcp.f32 %v641_v41 }
 0x4b1   : > { %v754_v42 = vpop.xlane.xlu0 %753  ;;  %v760_v46 = vpop.permute.xlu1 %759 }
 0x4b2   : > { %1821 = vrcp.f32 %v754_v42  ;;  %v765_v49 = vsel %vm648_vm3, %v760_v46, 0  ;;  %v1786_v46 = vld [vmem:[%s2334_s9 + $0x14] ss:$8 sps:$4 sm:$0xff]  }
 0x4b8   : > { %v1820_v43 = vpop.eup %1819 }
 0x4b9   : > { %v643_v45 = vmul.f32 %v1820_v43, %v1812_v23 }
 0x4bb   : > { %v644_v47 = vpack.c.bf16 %v643_v45, %v643_v45  ;;  %v1783_v45 = vld [vmem:[%s2334_s9 + $0x4] ss:$8 sps:$4 sm:$0xff]  }
 0x4bc   : > { %v1822_v48 = vpop.eup %1821 }
 0x4bd   : > { %1665 = vmatmul.mubr.msk.bf16.vlgmr.msra.gmra.mrb[8].mxu1 %vm632_vm5, %v644_v47  ;;  %v756_v50 = vmul.f32 %v1822_v48, %v1814_v25  ;;  %v1784_v47 = vld [vmem:[%s2334_s9 + $0x10] ss:$8 sps:$4 sm:$0xff]   ;;  %v1789_v48 = vld [vmem:[%s2334_s9 + $0x24] ss:$8 sps:$4 sm:$0xff]  }
 0x4be   : > { %1675 = vmatpush3.bf16.msra.mxu1 %v765_v49  ;;  %1676 = vmatprep.mubr.msk.bf16.mxu1 %vm1899_vm1, %v1898_v28  ;;  %v1787_v49 = vld [vmem:[%s2334_s9 + $0x20] ss:$8 sps:$4 sm:$0xff]  }
 0x4bf   : > { %1686 = vmatprep.subr.bf16.mxu1 %v1898_v28  ;;  %v757_v51 = vpack.c.bf16 %v756_v50, %v756_v50  ;;  %v1790_v50 = vld [vmem:[%s2334_s9 + $0x30] ss:$8 sps:$4 sm:$0xff]  }
 0x4c1   : > { %v995_v44 = vpop.xlane.xlu0 %994 }
 0x4c5   : > { %v880_v52 = vpop.permute.xlu0 %879  ;;  %1677 = vmatmul.mubr.msk.bf16.vlgmr.msra.gmra.mrb[12].mxu1 %vm632_vm5, %v757_v51 }
 0x4c6   : > { %v885_v53 = vsel %vm648_vm3, %v880_v52, 0  ;;  %1688 = vmatprep.mubr.msk.bf16.mxu1 %vm1899_vm1, %v1898_v28 }
 0x4c7   : > { %1687 = vmatpush3.bf16.msra.mxu1 %v885_v53 }
 0x4c8   : > { %1698 = vmatprep.subr.bf16.mxu1 %v1898_v28 }
 0x4e2   : > { %v875_v54 = vpop.xlane.xlu1 %874 }
 0x4e3   : > { %1823 = vrcp.f32 %v875_v54 }
 0x4e4   : > { %1825 = vrcp.f32 %v995_v44  ;;  %v1792_v44 = vld [vmem:[%s2334_s9 + $0x34] ss:$8 sps:$4 sm:$0xff]  }
 0x4e6   : > { %v1000_v57 = vpop.permute.xlu1 %999 }
 0x4e7   : > { %v1005_v60 = vsel %vm648_vm3, %v1000_v57, 0  ;;  %v1579_v57 = vld [vmem:[%s2333_s8] ss:$0 sm:$0xff] }
 0x4ed   : > { %v1824_v55 = vpop.eup %1823 }
 0x4ee   : > { %v877_v56 = vmul.f32 %v1824_v55, %v1818_v39  ;;  %v1826_v59 = vpop.eup %1825  ;;  %v1578_v55 = vld [vmem:[%s2332_s7] ss:$0 sm:$0xff] }
 0x4ef   : > { %v997_v61 = vmul.f32 %v1826_v59, %v1816_v33 }
 0x4f0   : > { %v878_v58 = vpack.c.bf16 %v877_v56, %v877_v56 }
 0x4f1   : > { %v998_v62 = vpack.c.bf16 %v997_v61, %v997_v61  ;;  %v1793_v61 = vld [vmem:[%s2336_s11 + $0x40] sm:$0xff]  }
 0x4f2   : > { %1689 = vmatmul.mubr.msk.bf16.vlgmr.msra.gmra.mrb[16].mxu1 %vm632_vm5, %v878_v58 }
 0x4f3   : > { %1699 = vmatpush3.bf16.msra.mxu1 %v1005_v60  ;;  %1700 = vmatprep.mubr.msk.bf16.mxu1 %vm1899_vm1, %v1898_v28 }
 0x4f4   : > { %1233 = vmatprep.subr.bf16.mxu1 %v1783_v45 }
 0x4fa   : > { %1701 = vmatmul.mubr.msk.bf16.vlgmr.msra.gmra.mrb[20].mxu1 %vm632_vm5, %v998_v62  ;;  %v1794_v62 = vld [vmem:[%s2336_s11] sm:$0xff]  }
 0x4fb   : > { %1265 = vmatprep.mubr.bf16.mxu1 %v1897_v11  ;;  %v1778_v11 = vld [vmem:[%s2330_s5 + $0x8] sm:$0xff]  }
 0x4fc   : > { %1707 = vmatpush3.bf16.msra.mxu0 %v1778_v11  ;;  %v1806_v11 = vld [vmem:[%s2336_s11 + $0x30] sm:$0xff]  }
 0x4fd   : > { %1708 = vmatprep.subr.bf16.mxu0 %v1898_v28 }
 0x500   : > { %1709 = vmatpush3.bf16.msra.mxu0 %v1779_v12  ;;  %v1807_v12 = vld [vmem:[%s2336_s11 + $0x78] sm:$0xff]  }
 0x501   : > { %1710 = vmatprep.subr.bf16.mxu0 %v1898_v28 }
 0x504   : > { %1711 = vmatpush3.bf16.msra.mxu0 %v1780_v14  ;;  %v1178_v14 = vld [vmem:[%s2335_s10] sm:$0x3] }
 0x505   : > { %1634 = vmatprep.subr.bf16.mxu0 %v1793_v61 }
 0x590   : > { %v686_v63 = vpop.f32.mrb[8].mxu1 }
 0x591   : > { %v692_v1 = vpack.c.bf16 %v686_v63, %v686_v63  ;;  %v1666_v2 = vpop.f32.mrb[9].mxu1  ;;  %v1795_v63 = vld [vmem:[%s2336_s11 + $0x48] sm:$0xff]  }
 0x592   : > { %v689_v3 = vpop.f32.mrb[10].mxu1  ;;  %v1797_v2 = vld [vmem:[%s2336_s11 + $0x50] sm:$0xff]  }
 0x593   : > { %694 = vst.msk [vmem:[#allocation2] sm:$0xf] %vm693_vm6, %v692_v1  ;;  %v1667_v4 = vpop.f32.mrb[11].mxu1  ;;  %v1796_v1 = vld [vmem:[%s2336_s11 + $0x8] sm:$0xff]   ;;  %v1798_v3 = vld [vmem:[%s2336_s11 + $0x10] sm:$0xff]  }
 0x594   : > { %v1799_v4 = vld [vmem:[%s2336_s11 + $0x58] sm:$0xff]  }
 0x598   : > { %v801_v5 = vpop.f32.mrb[12].mxu1 }
 0x599   : > { %v1610_v6 = vpack.c.bf16 %v801_v5, %v801_v5  ;;  %v1678_v7 = vpop.f32.mrb[13].mxu1  ;;  %v1800_v5 = vld [vmem:[%s2336_s11 + $0x18] sm:$0xff]  }
 0x59a   : > { %v804_v8 = vpop.f32.mrb[14].mxu1  ;;  %v1802_v7 = vld [vmem:[%s2336_s11 + $0x20] sm:$0xff]  }
 0x59b   : > { %811 = vrot.lane.b32.xlu1 %v1610_v6, %s1905_s20  ;;  %v1679_v9 = vpop.f32.mrb[15].mxu1  ;;  %v1801_v6 = vld [vmem:[%s2336_s11 + $0x60] sm:$0xff]   ;;  %v1803_v8 = vld [vmem:[%s2336_s11 + $0x68] sm:$0xff]   ;;  %s2282_s20 = scalar_lea.hbm %s2338_s13, %s1607_s15 }
 0x59c   : > { %v1804_v9 = vld [vmem:[%s2336_s11 + $0x28] sm:$0xff]  }
 0x5c5   : > { %v921_v13 = vpop.f32.mrb[16].mxu1 }
 0x5c6   : > { %v1611_v15 = vpack.c.bf16 %v921_v13, %v921_v13  ;;  %v1690_v16 = vpop.f32.mrb[17].mxu1  ;;  %v1808_v13 = vld [vmem:[%s2336_s11 + $0x38] sm:$0xff]  }
 0x5c7   : > { %v924_v17 = vpop.f32.mrb[18].mxu1  ;;  %v1187_v16 = vrot.slane %v1178_v14, %v486_v38 }
 0x5c8   : > { %931 = vrot.lane.b32.xlu0 %v1611_v15, %s2349_s22  ;;  %v1691_v18 = vpop.f32.mrb[19].mxu1  ;;  %v1183_v15 = vrot.slane %v1178_v14, %v482_v29  ;;  %s429_s22 = sand.u32 1, %s1887_s26  }
 0x5c9   : > { %s1472_s0 = scalar_lea.sflag [#allocation4], %s429_s22 }
 0x5cd   : > { %v1041_v19 = vpop.f32.mrb[20].mxu1 }
 0x5ce   : > { %v1612_v20 = vpack.c.bf16 %v1041_v19, %v1041_v19  ;;  %v1702_v21 = vpop.f32.mrb[21].mxu1 }
 0x5cf   : > { %v1044_v22 = vpop.f32.mrb[22].mxu1 }
 0x5d0   : > { %1051 = vrot.lane.b32.xlu1 %v1612_v20, %s2350_s30  ;;  %v1703_v23 = vpop.f32.mrb[23].mxu1  ;;  %s1548_s30 = sshll.u32 %s429_s22, 3 }
 0x5d1   : > { %s431_s23 = scalar_lea.vmem [#allocation3], %s1548_s30  ;;  %s1837_s30 = sshll.u32 %s1907_s29, 4  ;;  %s1838_s30 = int_to_ptr.vmem [resolvable:$false] %s1837_s30 }
 0x5d2   : > { %s1485_s24 = sshll.u32 %s431_s23, 4  ;;  %s1839_s2 = scalar_lea.vmem %s1838_s30, 256  ;;  %s2284_s24 = int_to_ptr.vmem [resolvable:$true] %s1485_s24 }
 0x5d3   : > { %s1833_s1 = scalar_lea.vmem %s2284_s24, 128  ;;  %p1840_p0 = scmp.lt.s32.totalorder %s2284_s24, %s1838_s30 }
 0x5d4   : > { %p1834_p11 = scmp.ne.s32.totalorder %s2284_s24, %s1833_s1  ;;  %p1841_p1 = scmp.lt.s32.totalorder %s1839_s2, %s1833_s1 }
 0x5d6   : > { %p1835_p12 = pnand %p1834_p11, %p2016_p5  ;;  %p1842_p2 = por %p1841_p1, %p1840_p0 }
 0x5d8   : > { %p1836_p13 = pneg %p1835_p12 }
 0x5da   : > { %p1843_p3 = pnand %p1842_p2, %p1836_p13 }
 0x60d   : > { %v812_v24 = vpop.permute.xlu1 %811 }
 0x60e   : > { %815 = vst.msk [vmem:[#allocation2] sm:$0xf] %vm814_vm7, %v812_v24 }
 0x63a   : > { %v932_v25 = vpop.permute.xlu0 %931 }
 0x63b   : > { %935 = vst.msk [vmem:[#allocation2] sm:$0xf] %vm934_vm8, %v932_v25 }
 0x642   : > { %v1052_v28 = vpop.permute.xlu1 %1051 }
 0x643   : > { %1055 = vst.msk [vmem:[#allocation2] sm:$0xf] %vm1054_vm9, %v1052_v28 }
 0x64a   : > { %v1056_v26 = vld [vmem:[#allocation2] sm:$0xf] }
 0x64b   : > { %1713 = vmatmul.mubr.msk.bf16.vlgmr.msra.gmra.mrb[12].mxu0 %vm440_vm0, %v1056_v26 }
 0x64c   : > { %1635 = vmatpush3.bf16.msra.mxu0 %v1794_v62 }
 0x64d   : > { %1636 = vmatprep.subr.bf16.mxu0 %v1795_v63 }
 0x650   : > { %1637 = vmatpush3.bf16.msra.mxu0 %v1796_v1 }
 0x651   : > { %1638 = vmatprep.subr.bf16.mxu0 %v1797_v2 }
 0x654   : > { %1639 = vmatpush3.bf16.msra.mxu0 %v1798_v3 }
 0x655   : > { %1640 = vmatprep.subr.bf16.mxu0 %v1799_v4 }
 0x658   : > { %1641 = vmatpush3.bf16.msra.mxu0 %v1800_v5 }
 0x659   : > { %1642 = vmatprep.subr.bf16.mxu0 %v1801_v6 }
 0x65c   : > { %1643 = vmatpush3.bf16.msra.mxu0 %v1802_v7 }
 0x65d   : > { %1644 = vmatprep.subr.bf16.mxu0 %v1803_v8 }
 0x660   : > { %1645 = vmatpush3.bf16.msra.mxu0 %v1804_v9 }
 0x661   : > { %1646 = vmatprep.subr.bf16.mxu0 %v1805_v10 }
 0x664   : > { %1647 = vmatpush3.bf16.msra.mxu0 %v1806_v11 }
 0x665   : > { %1648 = vmatprep.subr.bf16.mxu0 %v1807_v12 }
 0x668   : > { %1649 = vmatpush3.bf16.msra.mxu0 %v1808_v13 }
 0x71e   : > { %v1133_v31 = vpop.f32.mrb[12].mxu0 }
 0x71f   : > { %v1134_v32 = vadd.f32 %v1572_v30, %v1133_v31  ;;  %v1714_v33 = vpop.f32.mrb[13].mxu0 }
 0x720   : > { %v1136_v34 = vpop.f32.mrb[14].mxu0 }
 0x721   : > { %v2181_v35 = vadd.f32 %v1134_v32, %v2031_v0  ;;  %v1715_v36 = vpop.f32.mrb[15].mxu0  ;;  %v1781_v0 = vld [vmem:[%s2334_s9] ss:$8 sps:$4 sm:$0xff]  }
 0x722   : > { %1234 = vmatpush1.bf16.msra.mxu1 %v1781_v0  ;;  %v1589_v0 = vld [vmem:[%s2337_s12] ss:$0 sm:$0xff] }
 0x723   : > { %v1142_v37 = vsel %vm440_vm0, %v2181_v35, 0.0  ;;  %1235 = vmatprep.subr.bf16.mxu1 %v1786_v46 }
 0x724   : > { %1143 = vadd.xlane.f32.xlu0 %v1142_v37 }
 0x726   : > { %1236 = vmatpush1.bf16.msra.mxu1 %v1784_v47 }
 0x727   : > { %1237 = vmatprep.subr.bf16.mxu1 %v1789_v48 }
 0x72a   : > { %1238 = vmatpush1.bf16.msra.mxu1 %v1787_v49 }
 0x72b   : > { %1239 = vmatprep.subr.bf16.mxu1 %v1792_v44 }
 0x72e   : > { %1240 = vmatpush1.bf16.msra.mxu1 %v1790_v50 }
 0x7b1   : > { %v1144_v39 = vpop.xlane.xlu0 %1143 }
 0x7b2   : > { %v1145_v40 = vmul.f32 0.015625, %v1144_v39 }
 0x7b4   : > { %v1146_v41 = vsub.f32 %v2181_v35, %v1145_v40 }
 0x7b6   : > { %v1147_v42 = vmul.f32 %v1146_v41, %v1146_v41 }
 0x7b8   : > { %v1148_v43 = vsel %vm440_vm0, %v1147_v42, 0.0 }
 0x7b9   : > { %1149 = vadd.xlane.f32.xlu1 %v1148_v43 }
 0x846   : > { %v1150_v51 = vpop.xlane.xlu1 %1149 }
 0x847   : > { %v1151_v52 = vmul.f32 0.015625, %v1150_v51 }
 0x849   : > { %v1152_v53 = vadd.f32 1e-05, %v1151_v52 }
 0x84b   : > { %1827 = vrsqrt.f32 %v1152_v53 }
 0x855   : > { %v1828_v54 = vpop.eup %1827 }
 0x856   : > { %v1154_v56 = vmul.f32 %v1828_v54, %v1146_v41 }
 0x858   : > { %v1161_v58 = vmul.f32 %v1578_v55, %v1154_v56 }
 0x85a   : > { %v1168_v59 = vadd.f32 %v1579_v57, %v1161_v58 }
 0x85c   : > { %v1169_v60 = vpack.c.bf16 %v1168_v59, %v1168_v59 }
 0x85e   : > { %1588 = vmatmul.mubr.msk.bf16.vlgmr.msra.gmra.mrb[24].mxu1 %vm440_vm0, %v1169_v60 }
 0x931   : > { %v1267_v17 = vpop.f32.mrb[24].mxu1 }
 0x932   : > { %v1268_v18 = vadd.f32 %v1267_v17, %v1183_v15  ;;  %v1269_v19 = vpop.f32.mrb[25].mxu1 }
 0x933   : > { %v1270_v20 = vadd.f32 %v1269_v19, %v1187_v16  ;;  %v1271_v21 = vpop.f32.mrb[26].mxu1 }
 0x934   : > { %v1276_v22 = vmul.f32 %v1268_v18, %v1268_v18  ;;  %v1272_v23 = vpop.f32.mrb[27].mxu1  ;;  %v1274_v34 = vmul.f32 0.5, %v1268_v18 }
 0x935   : > { %v1277_v24 = vmul.f32 %v1270_v20, %v1270_v20  ;;  %v1275_v37 = vmul.f32 0.5, %v1270_v20 }
 0x936   : > { %v1278_v25 = vmul.f32 %v1276_v22, %v1268_v18 }
 0x937   : > { %v1279_v28 = vmul.f32 %v1277_v24, %v1270_v20 }
 0x938   : > { %v1280_v26 = vmul.f32 0.044715, %v1278_v25 }
 0x939   : > { %v1281_v30 = vmul.f32 0.044715, %v1279_v28 }
 0x93a   : > { %v1282_v31 = vadd.f32 %v1280_v26, %v1268_v18 }
 0x93b   : > { %v1283_v32 = vadd.f32 %v1281_v30, %v1270_v20 }
 0x93c   : > { %v1284_v33 = vmul.f32 0.7978846, %v1282_v31 }
 0x93d   : > { %v1285_v29 = vmul.f32 0.7978846, %v1283_v32 }
 0x93e   : > { %1829 = vtanh.f32 %v1284_v33 }
 0x93f   : > { %1831 = vtanh.f32 %v1285_v29 }
 0x948   : > { %v1830_v27 = vpop.eup %1829 }
 0x949   : > { %v1832_v38 = vpop.eup %1831  ;;  %v1288_v36 = vadd.f32 1.0, %v1830_v27 }
 0x94a   : > { %v1289_v39 = vadd.f32 1.0, %v1832_v38 }
 0x94b   : > { %v1290_v40 = vmul.f32 %v1288_v36, %v1274_v34 }
 0x94c   : > { %v1291_v41 = vmul.f32 %v1289_v39, %v1275_v37 }
 0x94d   : > { %v1292_v43 = vpack.c.bf16 %v1290_v40, %v1290_v40 }
 0x94e   : > { %v1293_v42 = vpack.c.bf16 %v1291_v41, %v1291_v41 }
 0x950   : > { %1461 = vmatprep.mubr.bf16.mxu0 %v1293_v42 }
 0x951   : > { %1462 = vmatmul.mubr.bf16.vlgmr.msra.gmra.mrb[16].mxu0 %v1292_v43 }
 0xa24   : > { %v1650_v45 = vpop.f32.mrb[16].mxu0 }
 0xa25   : > { %v1651_v46 = vpop.f32.mrb[17].mxu0 }
 0xa26   : > { %v1652_v47 = vadd.f32 %v1651_v46, %v1650_v45  ;;  %v1653_v48 = vpop.f32.mrb[18].mxu0 }
 0xa27   : > { %v1654_v49 = vpop.f32.mrb[19].mxu0 }
 0xa28   : > { %v1464_v50 = vadd.f32 %v1652_v47, %v1589_v0 }
 0xa2a   : > { %v1469_v44 = vadd.f32 %v1464_v50, %v2181_v35 }
 0xa2c   : > { %1470 = vst.msk [vmem:[%s431_s23] sm:$0xff] %vm440_vm0, %v1469_v44 }
 0xa2d   : > { %1846 = shalt.err (!%p1843_p3)
}
 0xa2e   : > { %s1847_s22 = scalar_lea.hbm %s2282_s20, 128  ;;  %s1851_s16 = scalar_lea.hbm %s2338_s13, 256 }
 0xa2f   : > { %p1848_p4 = scmp.ne.s32.totalorder %s2282_s20, %s1847_s22  ;;  %p1852_p9 = scmp.lt.u32.totalorder %s2282_s20, %s2338_s13 }
 0xa30   : > { %p1853_p10 = scmp.lt.u32.totalorder %s1851_s16, %s1847_s22  ;;  %p1855_p12 = scmp.lt.u32.totalorder %s1847_s22, %s2282_s20 }
 0xa31   : > { %p1849_p7 = pnand %p1848_p4, %p2016_p5 }
 0xa32   : > { %p1854_p11 = por %p1853_p10, %p1852_p9 }
 0xa33   : > { %p1850_p8 = pneg %p1849_p7 }
 0xa34   : > { %p1856_p13 = por %p1855_p12, %p1854_p11 }
 0xa36   : > { %p1857_p0 = pnand %p1856_p13, %p1850_p8 }
 0xa38   : > { %1860 = shalt.err (!%p1857_p0)
}
 0xa39   : > { %1716 = dma.vmem_to_hbm [thread:$0]  (%p2016_p5), %s2284_s24, 128, %s2282_s20, %s1472_s0  }
 0xa3a PF: > { %p1722_p1 = scmp.ge.s32.totalorder %s1895_s28, 2  ;;  %s1497_s2 = sand.u32 1, %s1883_s25  }
 0xa3b   : > { %s1498_s1 = scalar_lea.sflag [#allocation4], %s1497_s2 }
 0xa3c   : > { %p1719_p2 = pnand %p1722_p1, %p2020_p6 }
 0xa3e   : > { %1878 = dma.done.wait (!%p1719_p2), %s1498_s1, 128  }
 0xa3f   : > { %1880 = vsyncadd (!%p1719_p2), %s1498_s1, 4294967168  ;;  %p23_p3 = scmp.ge.s32.totalorder %s2003_s14, 4   ;;  %s2351_s25 = smov %s1887_s26 }
 0xa40   : > { %s2352_s26 = smov %s1891_s27  ;;  %s2353_s27 = smov %s2014_s17 }
 0xa41   : > { %s2354_s28 = smov %s2003_s14  ;;  %25 = sbr.rel (!%p23_p3) target bundleno = 7 (0x7), region = 107 }
 0xa48   :  { %1503 = vsyncpa [#allocation4], 1 }
 0xa49   :  { %1505 = vsyncpa [#allocation4 + $0x1], 1 }

</bundles_post_ra>
